<compile_context>
chip_gen: v6e
topology: v6e:2x2x1
jax: 0.10.0
libtpu: 0.0.40
codegen_flags: <defaults>
</compile_context>

<pallas_src>
import jax
import jax.numpy as jnp
from jax.experimental import pallas as pl
from jax.experimental.pallas import tpu as pltpu

LANE = 128


def _round_up(x, m):
    return (x + m - 1) // m * m


def _make_affinity_kernel(n_nodes, block_rows):
    """n_nodes: true (unpadded) node count; block_rows: rows per i/j tile."""
    inv_n = 1.0 / float(n_nodes)

    def kernel(xi_ref, xj_ref, wn_ref, ws_ref, w2p_ref, w2x_ref,
               y_ref, acc_ref, xn_ref):
        j = pl.program_id(1)

        # Init the resident pooled accumulator at the first neighbor tile.
        @pl.when(j == 0)
        def _():
            acc_ref[...] = jnp.zeros_like(acc_ref)

        xi = xi_ref[...]                                             # (TI, IN)

        # Self-side projection of the i-tile.  Recomputed per j-step: the MXU
        # cost is negligible next to the O(N^2 * H) elementwise stream.
        xs = jnp.dot(xi, ws_ref[...],
                     preferred_element_type=jnp.float32)             # (TI, HP)

        # Neighbor-side projection of this j-tile, staged in VMEM so the row
        # loop below can read it with dynamic sublane indexing.
        xn_ref[...] = jnp.dot(xj_ref[...], wn_ref[...],
                              preferred_element_type=jnp.float32)    # (TJ, HP)

        # Stream the neighbor reduction: never materialize (TI, TJ, HP).
        # Only the first `valid_rows` rows of this tile are real nodes (the
        # rest is zero padding added by the wrapper), so the dynamic loop
        # bound masks them out with no extra selects.
        valid_rows = jnp.minimum(block_rows, n_nodes - j * block_rows)

        def body(r, acc):
            row = xn_ref[pl.ds(r, 1), :]                             # (1, HP)
            return acc + jnp.clip(row + xs, -1.0, 1.0)               # Hardtanh

        acc_ref[...] += jax.lax.fori_loop(
            0, valid_rows, body, jnp.zeros(acc_ref.shape, acc_ref.dtype))

        # Finalize on the last neighbor tile: mean + second linear, one
        # lane-dense unmasked store of the output tile.
        @pl.when(j == pl.num_programs(1) - 1)
        def _():
            pooled = acc_ref[...] * inv_n                            # mean over j
            y = jnp.dot(pooled, w2p_ref[...],
                        preferred_element_type=jnp.float32)
            y = y + jnp.dot(xi, w2x_ref[...],
                            preferred_element_type=jnp.float32)
            y_ref[...] = y

    return kernel


def prepare_affinity_params(w, w2):
    """One-time parameter layout prep (hoisted out of the per-call path):
    split w into neighbor/self halves, transpose to MXU-native orientation,
    split w2 into pooled/x column blocks, and zero-pad hidden/out_dim to a
    128-lane boundary."""
    hidden, two_in = w.shape
    in_dim = two_in // 2
    out_dim = w2.shape[0]
    hp = _round_up(hidden, LANE)
    outp = _round_up(out_dim, LANE)

    w = w.astype(jnp.float32)
    w2 = w2.astype(jnp.float32)
    wn_t = jnp.zeros((in_dim, hp), jnp.float32).at[:, :hidden].set(w[:, :in_dim].T)
    ws_t = jnp.zeros((in_dim, hp), jnp.float32).at[:, :hidden].set(w[:, in_dim:].T)
    w2p_t = jnp.zeros((hp, outp), jnp.float32).at[:hidden, :out_dim].set(w2[:, :hidden].T)
    w2x_t = jnp.zeros((in_dim, outp), jnp.float32).at[:, :out_dim].set(w2[:, hidden:].T)
    return dict(wn_t=wn_t, ws_t=ws_t, w2p_t=w2p_t, w2x_t=w2x_t,
                in_dim=in_dim, hidden=hidden, out_dim=out_dim)


def affinity_kernel_forward(x, params, *, block_rows=None, interpret=False):
    """x: (N, in_dim). Returns (N, out_dim)."""
    n, in_dim = x.shape
    assert in_dim == params["in_dim"]
    out_dim = params["out_dim"]
    wn_t, ws_t = params["wn_t"], params["ws_t"]
    w2p_t, w2x_t = params["w2p_t"], params["w2x_t"]
    hp = wn_t.shape[1]
    outp = w2p_t.shape[1]

    if block_rows is None:
        block_rows = min(128, _round_up(n, 8))
    block_rows = max(8, _round_up(block_rows, 8))
    n_pad = _round_up(n, block_rows)
    x_pad = jnp.pad(x.astype(jnp.float32), ((0, n_pad - n), (0, 0)))

    grid = (n_pad // block_rows, n_pad // block_rows)
    kernel = _make_affinity_kernel(n, block_rows)

    y_pad = pl.pallas_call(
        kernel,
        out_shape=jax.ShapeDtypeStruct((n_pad, outp), jnp.float32),
        grid=grid,
        in_specs=[
            pl.BlockSpec((block_rows, in_dim), lambda i, j: (i, 0)),   # x (i-tile)
            pl.BlockSpec((block_rows, in_dim), lambda i, j: (j, 0)),   # x (j-tile)
            pl.BlockSpec((in_dim, hp), lambda i, j: (0, 0)),           # Wn^T (padded)
            pl.BlockSpec((in_dim, hp), lambda i, j: (0, 0)),           # Ws^T (padded)
            pl.BlockSpec((hp, outp), lambda i, j: (0, 0)),             # W2 pooled^T
            pl.BlockSpec((in_dim, outp), lambda i, j: (0, 0)),         # W2 x^T
        ],
        out_specs=pl.BlockSpec((block_rows, outp), lambda i, j: (i, 0)),
        scratch_shapes=[
            pltpu.VMEM((block_rows, hp), jnp.float32),   # pooled accumulator
            pltpu.VMEM((block_rows, hp), jnp.float32),   # staged xn j-tile
        ],
        compiler_params=pltpu.CompilerParams(
            dimension_semantics=("parallel", "arbitrary"),
            vmem_limit_bytes=32 * 1024 * 1024,
        ),
        interpret=interpret,
    )(x_pad, x_pad, wn_t, ws_t, w2p_t, w2x_t)

    # Wrapper-side un-padding (free layout plumbing).
    return y_pad[:n, :out_dim]


def reference(x, w, w2):
    """Pure-JAX re-implementation of AffinityKernel.forward (defaults),
    including the distance-sorted graph / per-node neighborhood loop."""
    n, in_dim = x.shape
    k = n  # self.k is None -> k = N
    d = jnp.linalg.norm(x[None, :, :] - x[:, None, :], axis=-1)   # d[i, j] = ||x_j - x_i||
    _, graph = jax.lax.top_k(-d, k)                               # k smallest distances

    def node(i):
        nb = x[graph[i]]                                          # (k, in_dim)
        self_rep = jnp.broadcast_to(x[i], (k, in_dim))
        neighbor_mat = jnp.concatenate([nb, self_rep], axis=-1)   # (k, 2*in_dim)
        h = jnp.clip(neighbor_mat @ w.T, -1.0, 1.0)               # Hardtanh
        return jnp.mean(h, axis=0)                                # average pooling

    pooled = jax.vmap(node)(jnp.arange(n))                        # (N, hidden)
    return jnp.concatenate([pooled, x], axis=-1) @ w2.T           # no nonlinearity_2


if __name__ == "__main__":
    N, IN_DIM, HIDDEN, OUT_DIM = 40, 16, 32, 24

    key = jax.random.PRNGKey(0)
    k_x, k_w, k_w2 = jax.random.split(key, 3)

    # deterministic parameter init matching the PyTorch module's __init__
    std1 = 1.0 / (2 * IN_DIM) ** 0.5
    w = jax.random.uniform(k_w, (HIDDEN, 2 * IN_DIM), jnp.float32, -std1, std1)
    std2 = 1.0 / (IN_DIM + HIDDEN) ** 0.5
    w2 = jax.random.uniform(k_w2, (OUT_DIM, IN_DIM + HIDDEN), jnp.float32, -std2, std2)
    x = jax.random.normal(k_x, (N, IN_DIM), jnp.float32)

    params = prepare_affinity_params(w, w2)          # one-time layout prep
    # block_rows=16 exercises a (3, 3) grid (i parallel, j reduction) with a
    # partially padded last j-tile; real workloads would use 128-row tiles.
    y = affinity_kernel_forward(x, params, block_rows=16)
    y = jax.block_until_ready(y)

    y_ref = reference(x, w, w2)
    assert y.shape == (N, OUT_DIM)
    assert jnp.allclose(y, y_ref, rtol=1e-3, atol=1e-3), "mismatch vs reference"

    print("KERNEL_OK")
</pallas_src>

<mosaic_0001>
module attributes {stable_mosaic.version = 11 : i64} {
  func.func @kernel(%arg0: i32, %arg1: i32, %arg2: memref<16x16xf32, #tpu.memory_space<vmem>>, %arg3: memref<16x16xf32, #tpu.memory_space<vmem>>, %arg4: memref<16x128xf32, #tpu.memory_space<vmem>>, %arg5: memref<16x128xf32, #tpu.memory_space<vmem>>, %arg6: memref<128x128xf32, #tpu.memory_space<vmem>>, %arg7: memref<16x128xf32, #tpu.memory_space<vmem>>, %arg8: memref<16x128xf32, #tpu.memory_space<vmem>>, %arg9: memref<16x128xf32, #tpu.memory_space<vmem>>, %arg10: memref<16x128xf32, #tpu.memory_space<vmem>>) attributes {dimension_semantics = [#tpu.dimension_semantics<parallel>, #tpu.dimension_semantics<arbitrary>], iteration_bounds = array<i64: 3, 3>, scalar_prefetch = 0 : i64, scratch_operands = 2 : i64, tpu.core_type = #tpu.core_type<tc>, window_params = [{transform_indices = @transform_0, window_bounds = array<i64: 16, 16>}, {transform_indices = @transform_1, window_bounds = array<i64: 16, 16>}, {pipeline_mode = #tpu.pipeline_mode<synchronous>, transform_indices = @transform_2, window_bounds = array<i64: 16, 128>}, {pipeline_mode = #tpu.pipeline_mode<synchronous>, transform_indices = @transform_3, window_bounds = array<i64: 16, 128>}, {pipeline_mode = #tpu.pipeline_mode<synchronous>, transform_indices = @transform_4, window_bounds = array<i64: 128, 128>}, {pipeline_mode = #tpu.pipeline_mode<synchronous>, transform_indices = @transform_5, window_bounds = array<i64: 16, 128>}, {transform_indices = @transform_6, window_bounds = array<i64: 16, 128>}]} {
    %c0_i32 = arith.constant 0 : i32
    %0 = arith.cmpi eq, %arg1, %c0_i32 : i32
    %1 = arith.extui %0 : i1 to i32
    %c0_i32_0 = arith.constant 0 : i32
    %2 = arith.cmpi ne, %1, %c0_i32_0 : i32
    scf.if %2 {
      %cst_19 = arith.constant 0.000000e+00 : f32
      %23 = vector.broadcast %cst_19 : f32 to vector<16x128xf32>
      %c0_20 = arith.constant 0 : index
      %c0_21 = arith.constant 0 : index
      %24 = vector.load %arg9[%c0_20, %c0_21] : memref<16x128xf32, #tpu.memory_space<vmem>>, vector<16x128xf32>
      tpu.vector_store %arg9[%c0_20, %c0_21], %23 {strides = array<i32>} : memref<16x128xf32, #tpu.memory_space<vmem>>, vector<16x128xf32>,
    } else {
    }
    %c0 = arith.constant 0 : index
    %c0_1 = arith.constant 0 : index
    %3 = vector.load %arg2[%c0, %c0_1] : memref<16x16xf32, #tpu.memory_space<vmem>>, vector<16x16xf32>
    %c0_2 = arith.constant 0 : index
    %c0_3 = arith.constant 0 : index
    %4 = vector.load %arg5[%c0_2, %c0_3] : memref<16x128xf32, #tpu.memory_space<vmem>>, vector<16x128xf32>
    %cst = arith.constant dense<0.000000e+00> : vector<16x128xf32>
    %5 = tpu.matmul %3, %4, %cst {dimension_numbers = #tpu.dot_dimension_numbers<[1], [0], [0], [1], [0, 0, 1, 1], [], []>} : vector<16x16xf32>, vector<16x128xf32>, vector<16x128xf32> -> vector<16x128xf32>
    %c0_4 = arith.constant 0 : index
    %c0_5 = arith.constant 0 : index
    %6 = vector.load %arg3[%c0_4, %c0_5] : memref<16x16xf32, #tpu.memory_space<vmem>>, vector<16x16xf32>
    %c0_6 = arith.constant 0 : index
    %c0_7 = arith.constant 0 : index
    %7 = vector.load %arg4[%c0_6, %c0_7] : memref<16x128xf32, #tpu.memory_space<vmem>>, vector<16x128xf32>
    %cst_8 = arith.constant dense<0.000000e+00> : vector<16x128xf32>
    %8 = tpu.matmul %6, %7, %cst_8 {dimension_numbers = #tpu.dot_dimension_numbers<[1], [0], [0], [1], [0, 0, 1, 1], [], []>} : vector<16x16xf32>, vector<16x128xf32>, vector<16x128xf32> -> vector<16x128xf32>
    %c0_9 = arith.constant 0 : index
    %c0_10 = arith.constant 0 : index
    %9 = vector.load %arg10[%c0_9, %c0_10] : memref<16x128xf32, #tpu.memory_space<vmem>>, vector<16x128xf32>
    tpu.vector_store %arg10[%c0_9, %c0_10], %8 {strides = array<i32>} : memref<16x128xf32, #tpu.memory_space<vmem>>, vector<16x128xf32>,
    %c16_i32 = arith.constant 16 : i32
    %10 = arith.muli %arg1, %c16_i32 : i32
    %c40_i32 = arith.constant 40 : i32
    %11 = arith.subi %c40_i32, %10 : i32
    %c16_i32_11 = arith.constant 16 : i32
    %12 = arith.minsi %c16_i32_11, %11 : i32
    %c0_12 = arith.constant 0 : index
    %c0_13 = arith.constant 0 : index
    %13 = vector.load %arg9[%c0_12, %c0_13] : memref<16x128xf32, #tpu.memory_space<vmem>>, vector<16x128xf32>
    %cst_14 = arith.constant 0.000000e+00 : f32
    %14 = vector.broadcast %cst_14 : f32 to vector<16x128xf32>
    %c0_i32_15 = arith.constant 0 : i32
    %15 = arith.subi %12, %c0_i32_15 : i32
    %16 = arith.addi %c0_i32_15, %15 : i32
    %c1_i32 = arith.constant 1 : i32
    %17 = scf.for %arg11 = %c0_i32_15 to %16 step %c1_i32 iter_args(%arg12 = %14) -> (vector<16x128xf32>)  : i32 {
      %23 = arith.index_cast %arg11 : i32 to index
      %c0_19 = arith.constant 0 : index
      %24 = vector.load %arg10[%23, %c0_19] : memref<16x128xf32, #tpu.memory_space<vmem>>, vector<1x128xf32>
      %25 = vector.broadcast %24 : vector<1x128xf32> to vector<16x128xf32>
      %26 = arith.addf %25, %5 : vector<16x128xf32>
      %cst_20 = arith.constant -1.000000e+00 : f32
      %cst_21 = arith.constant 1.000000e+00 : f32
      %27 = vector.broadcast %cst_20 : f32 to vector<16x128xf32>
      %28 = arith.maximumf %27, %26 : vector<16x128xf32>
      %29 = vector.broadcast %cst_21 : f32 to vector<16x128xf32>
      %30 = arith.minimumf %29, %28 : vector<16x128xf32>
      %31 = arith.addf %arg12, %30 : vector<16x128xf32>
      scf.yield %31 : vector<16x128xf32>
    }
    %18 = arith.addf %13, %17 : vector<16x128xf32>
    %c0_16 = arith.constant 0 : index
    %c0_17 = arith.constant 0 : index
    %19 = vector.load %arg9[%c0_16, %c0_17] : memref<16x128xf32, #tpu.memory_space<vmem>>, vector<16x128xf32>
    tpu.vector_store %arg9[%c0_16, %c0_17], %18 {strides = array<i32>} : memref<16x128xf32, #tpu.memory_space<vmem>>, vector<16x128xf32>,
    %c2_i32 = arith.constant 2 : i32
    %20 = arith.cmpi eq, %arg1, %c2_i32 : i32
    %21 = arith.extui %20 : i1 to i32
    %c0_i32_18 = arith.constant 0 : i32
    %22 = arith.cmpi ne, %21, %c0_i32_18 : i32
    scf.if %22 {
      %c0_19 = arith.constant 0 : index
      %c0_20 = arith.constant 0 : index
      %23 = vector.load %arg9[%c0_19, %c0_20] : memref<16x128xf32, #tpu.memory_space<vmem>>, vector<16x128xf32>
      %cst_21 = arith.constant 2.500000e-02 : f32
      %24 = vector.broadcast %cst_21 : f32 to vector<16x128xf32>
      %25 = arith.mulf %23, %24 : vector<16x128xf32>
      %c0_22 = arith.constant 0 : index
      %c0_23 = arith.constant 0 : index
      %26 = vector.load %arg6[%c0_22, %c0_23] : memref<128x128xf32, #tpu.memory_space<vmem>>, vector<128x128xf32>
      %cst_24 = arith.constant dense<0.000000e+00> : vector<16x128xf32>
      %27 = tpu.matmul %25, %26, %cst_24 {dimension_numbers = #tpu.dot_dimension_numbers<[1], [0], [0], [1], [0, 0, 1, 1], [], []>} : vector<16x128xf32>, vector<128x128xf32>, vector<16x128xf32> -> vector<16x128xf32>
      %c0_25 = arith.constant 0 : index
      %c0_26 = arith.constant 0 : index
      %28 = vector.load %arg7[%c0_25, %c0_26] : memref<16x128xf32, #tpu.memory_space<vmem>>, vector<16x128xf32>
      %cst_27 = arith.constant dense<0.000000e+00> : vector<16x128xf32>
      %29 = tpu.matmul %3, %28, %cst_27 {dimension_numbers = #tpu.dot_dimension_numbers<[1], [0], [0], [1], [0, 0, 1, 1], [], []>} : vector<16x16xf32>, vector<16x128xf32>, vector<16x128xf32> -> vector<16x128xf32>
      %30 = arith.addf %27, %29 : vector<16x128xf32>
      %c0_28 = arith.constant 0 : index
      %c0_29 = arith.constant 0 : index
      %31 = vector.load %arg8[%c0_28, %c0_29] : memref<16x128xf32, #tpu.memory_space<vmem>>, vector<16x128xf32>
      tpu.vector_store %arg8[%c0_28, %c0_29], %30 {strides = array<i32>} : memref<16x128xf32, #tpu.memory_space<vmem>>, vector<16x128xf32>,
    } else {
    }
    return
  }
  func.func @transform_0(%arg0: i32, %arg1: i32) -> (i32, i32) {
    %c0_i32 = arith.constant 0 : i32
    %c0_i32_0 = arith.constant 0 : i32
    return %arg0, %c0_i32 : i32, i32
  }
  func.func @transform_1(%arg0: i32, %arg1: i32) -> (i32, i32) {
    %c0_i32 = arith.constant 0 : i32
    %c0_i32_0 = arith.constant 0 : i32
    return %arg1, %c0_i32 : i32, i32
  }
  func.func @transform_2(%arg0: i32, %arg1: i32) -> (i32, i32) {
    %c0_i32 = arith.constant 0 : i32
    %c0_i32_0 = arith.constant 0 : i32
    %c0_i32_1 = arith.constant 0 : i32
    return %c0_i32, %c0_i32_0 : i32, i32
  }
  func.func @transform_3(%arg0: i32, %arg1: i32) -> (i32, i32) {
    %c0_i32 = arith.constant 0 : i32
    %c0_i32_0 = arith.constant 0 : i32
    %c0_i32_1 = arith.constant 0 : i32
    return %c0_i32, %c0_i32_0 : i32, i32
  }
  func.func @transform_4(%arg0: i32, %arg1: i32) -> (i32, i32) {
    %c0_i32 = arith.constant 0 : i32
    %c0_i32_0 = arith.constant 0 : i32
    %c0_i32_1 = arith.constant 0 : i32
    return %c0_i32, %c0_i32_0 : i32, i32
  }
  func.func @transform_5(%arg0: i32, %arg1: i32) -> (i32, i32) {
    %c0_i32 = arith.constant 0 : i32
    %c0_i32_0 = arith.constant 0 : i32
    %c0_i32_1 = arith.constant 0 : i32
    return %c0_i32, %c0_i32_0 : i32, i32
  }
  func.func @transform_6(%arg0: i32, %arg1: i32) -> (i32, i32) {
    %c0_i32 = arith.constant 0 : i32
    %c0_i32_0 = arith.constant 0 : i32
    return %arg0, %c0_i32 : i32, i32
  }
}

</mosaic_0001>

<bundles_post_ra>
// kernel: tpu_custom_call.1
= control target key start
LH: loop header
LB: loop body
LE: loop exit
PB: predicated region body
PF: predicated region fallthrough
CT: control target
= control target key end

     0   :  { %11 = vsyncpa [#allocation5], 0  ;;  %s1672_s0 = inlined_call_operand.vmem [shape: f32[48,16], index: 0, kind: input, shape index: {}]   ;;  %s1673_s1 = inlined_call_operand.vmem [shape: f32[48,16], index: 1, kind: input, shape index: {}]   ;;  %s1674_s2 = inlined_call_operand.hbm [shape: f32[16,128], index: 2, kind: input, shape index: {}]   ;;  %s1675_s3 = inlined_call_operand.hbm [shape: f32[16,128], index: 3, kind: input, shape index: {}]   ;;  %s1676_s4 = inlined_call_operand.vmem [shape: f32[128,128], index: 4, kind: input, shape index: {}]   ;;  %s1677_s5 = inlined_call_operand.hbm [shape: f32[16,128], index: 5, kind: input, shape index: {}]   ;;  %s1678_s6 = inlined_call_operand.hbm [shape: f32[48,128], index: 6, kind: output, shape index: {}]  }
   0x1   :  { %12 = vsyncpa [#allocation8], 0 }
   0x2   :  { %13 = vsyncpa [#allocation6], 0 }
   0x3   :  { %15 = vsyncpa [#allocation6 + $0x1], 0  ;;  %s1397_s21 = smov 0   ;;  %s1399_s22 = smov 0  }
   0x4   :  { %s1401_s23 = smov 0   ;;  %s1403_s24 = smov 0  }
   0x5   :  { %s1405_s25 = smov 0   ;;  %s1407_s26 = smov 0  }
   0x6   :  { %s1409_s27 = smov 0   ;;  %s1411_s28 = smov 0  }
   0x7 LB: > { %s862_s29 = sadd.s32 4294967295, %s1331_s28   ;;  %s863_s30 = sadd.s32 4294967294, %s1331_s28   ;;  %s1331_s28 = sphi %s1411_s28, %s21_s28   ;;  %s1327_s27 = sphi %s1409_s27, %s1696_s27   ;;  %s1323_s26 = sphi %s1407_s26, %s1695_s26   ;;  %s1319_s25 = sphi %s1405_s25, %s1694_s25   ;;  %s1315_s24 = sphi %s1403_s24, %s1693_s24   ;;  %s1311_s23 = sphi %s1401_s23, %s1692_s23   ;;  %s1307_s22 = sphi %s1399_s22, %s1691_s22   ;;  %s1303_s21 = sphi %s1397_s21, %s1690_s21  }
   0x8   : > { %s30_s7 = sadd.s32 1, %s1323_s26  ;;  %s33_s8 = sadd.s32 1, %s1327_s27 }
   0x9   : > { %p31_p0 = scmp.ge.s32.totalorder %s30_s7, 3  ;;  %s176_s9 = sadd.s32 1, %s1311_s23 }
   0xa   : > { %p186_p1 = scmp.ne.s32.totalorder %s1311_s23, %s1307_s22  ;;  %p187_p2 = scmp.eq.s32.totalorder %s862_s29, 8 }
   0xb   : > { %s1698_s7 = smov (%p31_p0, %s30_s7), 0  ;;  %s1700_s8 = smov (!%p31_p0, %s33_s8), %s1327_s27 }
   0xc   : > { %1680 = sst [smem:[#allocation14_spill]] %s1698_s7  ;;  %p1447_p3 = por %p187_p2, %p186_p1 }
   0xd   : > { %p192_p4 = scmp.ne.s32.totalorder %s1307_s22, %s1303_s21  ;;  %p35_p5 = scmp.ge.s32.totalorder %s1700_s8, 3 }
   0xe   : > { %p193_p6 = scmp.eq.s32.totalorder %s863_s30, 8  ;;  %p864_p7 = scmp.ge.s32.totalorder %s1331_s28, 1 }
   0xf   : > { %p200_p8 = scmp.lt.s32.totalorder %s1331_s28, 10  ;;  %s1702_s8 = smov (%p35_p5, %s1700_s8), 0 }
  0x10   : > { %1682 = sst [smem:[#allocation15_spill]] %s1702_s8  ;;  %p1457_p9 = por %p193_p6, %p192_p4 }
  0x11   : > { %p1461_p10 = pnand %p864_p7, %p200_p8  ;;  %s173_s13 = ssub.s32 %s1327_s27, %s1702_s8 }
  0x12   : > { %s1683_s11 = scalar_select %p1457_p9, 1, 0 }
  0x13   : > { %p174_p11 = scmp.eq.s32.totalorder %s173_s13, 0  ;;  %p1000_p12 = pneg %p1461_p10 }
  0x14   : > { %p1469_p13 = scmp.eq.s32.totalorder %s862_s29, 0  ;;  %s1353_s17 = smov [#allocation7]  }
  0x15   : > { %s1474_s15 = scalar_select %p174_p11, %s1311_s23, %s176_s9  }
  0x16   : > { %p1478_p0 = pnand %p1469_p13, %p1000_p12  ;;  %s225_s18 = sshll.u32 %s1353_s17, 4  ;;  %s226_s18 = int_to_ptr.vmem [resolvable:$true] %s225_s18 }
  0x17   : > { %s1144_s19 = scalar_lea.vmem %s226_s18, 256  ;;  %p1152_p6 = scmp.lt.s32.totalorder %s226_s18, %s226_s18 }
  0x18   : > { %p1135_p1 = pneg %p1478_p0  ;;  %p1145_p2 = scmp.ne.s32.totalorder %s226_s18, %s1144_s19 }
  0x19   : > { %p1153_p7 = scmp.lt.s32.totalorder %s1144_s19, %s1144_s19 }
  0x1a   : > { %p1147_p4 = pnand %p1145_p2, %p1135_p1 }
  0x1b   : > { %p1154_p8 = por %p1153_p7, %p1152_p6 }
  0x1c   : > { %p1148_p5 = pneg %p1147_p4 }
  0x1e   : > { %p1155_p11 = pnand %p1154_p8, %p1148_p5 }
  0x20   : > { %1158 = shalt.err (!%p1155_p11)
}
  0x21   : > { %s1354_s20 = smov 128   ;;  %s1355_s29 = smov 8  }
  0x22   : > { %1006 = dma.hbm_to_vmem [thread:$0]  (!%p1478_p0), %s1675_s3, 256, %s226_s18, [#allocation8], %s1354_s20, %s1354_s20, %s1355_s29  }
  0x23   : > { %s1356_s13 = smov [#allocation4]   ;;  %s1357_s8 = smov [#allocation9]  }
  0x24   : > { %s212_s17 = sshll.u32 %s1356_s13, 4  ;;  %s241_s7 = sshll.u32 %s1357_s8, 4  ;;  %s213_s17 = int_to_ptr.vmem [resolvable:$true] %s212_s17  ;;  %s242_s7 = int_to_ptr.vmem [resolvable:$true] %s241_s7 }
  0x25   : > { %s1170_s19 = scalar_lea.vmem %s213_s17, 256  ;;  %p1178_p5 = scmp.lt.s32.totalorder %s213_s17, %s213_s17 }
  0x26   : > { %p1171_p12 = scmp.ne.s32.totalorder %s213_s17, %s1170_s19  ;;  %p1179_p6 = scmp.lt.s32.totalorder %s1170_s19, %s1170_s19 }
  0x28   : > { %p1173_p2 = pnand %p1171_p12, %p1135_p1  ;;  %p1180_p7 = por %p1179_p6, %p1178_p5 }
  0x2a   : > { %p1174_p4 = pneg %p1173_p2 }
  0x2c   : > { %p1181_p8 = pnand %p1180_p7, %p1174_p4 }
  0x2e   : > { %1184 = shalt.err (!%p1181_p8)
}
  0x2f   : > { %1003 = dma.hbm_to_vmem [thread:$0]  (!%p1478_p0), %s1674_s2, 256, %s213_s17, [#allocation5], %s1354_s20, %s1354_s20, %s1355_s29  }
  0x30   : > { %s1196_s30 = scalar_lea.vmem %s242_s7, 256  ;;  %p1204_p9 = scmp.lt.s32.totalorder %s242_s7, %s242_s7 }
  0x31   : > { %p1197_p11 = scmp.ne.s32.totalorder %s242_s7, %s1196_s30  ;;  %p1205_p5 = scmp.lt.s32.totalorder %s1196_s30, %s1196_s30 }
  0x33   : > { %p1199_p12 = pnand %p1197_p11, %p1135_p1  ;;  %p1206_p4 = por %p1205_p5, %p1204_p9 }
  0x35   : > { %p1200_p2 = pneg %p1199_p12 }
  0x37   : > { %p1207_p6 = pnand %p1206_p4, %p1200_p2 }
  0x39   : > { %1210 = shalt.err (!%p1207_p6)
}
  0x3a   : > { %1009 = dma.hbm_to_vmem [thread:$0]  (!%p1478_p0), %s1677_s5, 256, %s242_s7, [#allocation8], %s1354_s20, %s1354_s20, %s1355_s29  }
  0x3b   : > { %275 = sbr.rel (%p1461_p10) target bundleno = 558 (0x22e), region = 44 }
  0x40   : > { %1290 = dma.done.wait (%p1469_p13), [#allocation5], 256  }
  0x41   : > { %1292 = vsyncadd (%p1469_p13), [#allocation5], 4294967040 }
  0x42   : > { %1294 = dma.done.wait (%p1469_p13), [#allocation8], 512  }
  0x43   : > { %1296 = vsyncadd (%p1469_p13), [#allocation8], 4294966784  ;;  %s315_s7 = sand.u32 1, %s1307_s22   ;;  %s874_s16 = sshll.u32 %s1319_s25, 1 }
  0x44   : > { %s873_s12 = sshll.u32 %s315_s7, 4  ;;  %p319_p9 = scmp.lt.s32.totalorder %s874_s16, 5 }
  0x45   : > { %s876_s20 = sshll.u32 %s1315_s24, 1  ;;  %s1538_s13 = scalar_lea.vmem [#allocation10], %s873_s12 }
  0x46   : > { %s1704_s16 = smov (!%p319_p9, %s874_s16), 5  ;;  %p325_p10 = scmp.lt.s32.totalorder %s876_s20, 5 }
  0x47   : > { %s875_s29 = sshll.u32 %s1704_s16, 3  ;;  %p878_p13 = scmp.ne.s32.totalorder %s1315_s24, 0 }
  0x48   : > { %s322_s18 = scalar_lea.vmem %s1672_s0, %s875_s29  ;;  %s1706_s20 = smov (!%p325_p10, %s876_s20), 5 }
  0x49   : > { %s877_s14 = sshll.u32 %s1706_s20, 3  ;;  %334 = sbr.rel (%p878_p13) target bundleno = 80 (0x50), region = 60 }
  0x4a   : > { %s328_s9 = scalar_lea.vmem %s1673_s1, %s877_s14 }
  0x4e   : > { %v1358_v0 = vmov 0.0  }
  0x4f   : > { %335 = vst [vmem:[#allocation2] sm:$0xff] %v1358_v0  ;;  %336 = vst [vmem:[#allocation2 + $0x8] sm:$0xff] %v1358_v0 }
  0x50 PF: > { %v340_v1 = vld [vmem:[#allocation7 + $0x8] sm:$0xff]  ;;  %v426_v2 = vld [vmem:[#allocation4 + $0x8] sm:$0xff]  ;;  %v339_v3 = vld [vmem:[#allocation7] sm:$0xff]  ;;  %vm341_vm0 = vcmask 130048   ;;  %s883_s16 = sshll.u32 %s1315_s24, 4  ;;  %v1345_v15 = vmov 0.0  }
  0x51   : > { %930 = vmatprep.subr.mxu0 %v340_v1  ;;  %937 = vmatprep.subr.mxu1 %v426_v2  ;;  %v425_v4 = vld [vmem:[#allocation4] sm:$0xff]  ;;  %v1543_v7 = vld [vmem:[%s322_s18 + $0x8] sm:$0xff]  ;;  %s511_s12 = ssub.s32 40, %s883_s16  ;;  %v1349_v16 = vmov 0.0  }
  0x52   : > { %v1541_v5 = vld [vmem:[%s322_s18] sm:$0xff]  ;;  %931 = vmatpush3.msra.mxu0 %v340_v1  ;;  %938 = vmatpush3.msra.mxu1 %v426_v2  ;;  %v424_v8 = vld [vmem:[%s328_s9 + $0x8] sm:$0xff]  ;;  %p512_p0 = scmp.lt.s32.totalorder %s511_s12, 16  ;;  %p896_p1 = scmp.le.s32.totalorder %s511_s12, 0 }
  0x53   : > { %v423_v6 = vld [vmem:[%s328_s9] sm:$0xff]  ;;  %932 = vmatprep.subr.mxu0 %v339_v3  ;;  %939 = vmatprep.subr.mxu1 %v425_v4  ;;  %s1341_s29 = smov (!%p896_p1), 0  }
  0x54   : > { %933 = vmatpush3.msra.mxu0 %v339_v3  ;;  %934 = vmatprep.mubr.msk.f32.mxu0 %vm341_vm0, %v1541_v5  ;;  %s1552_s20 = scalar_select %p512_p0, %s511_s12, 16 }
  0x55   : > { %940 = vmatpush3.msra.mxu1 %v425_v4  ;;  %941 = vmatprep.mubr.msk.f32.mxu1 %vm341_vm0, %v423_v6 }
  0x56   : > { %935 = vmatmul.mubr.msk.f32.vlgmr.msra.gmra.mxu0 %vm341_vm0, %v1543_v7  ;;  %942 = vmatmul.mubr.msk.f32.vlgmr.msra.gmra.mxu1 %vm341_vm0, %v424_v8  ;;  %v514_v9 = vld [vmem:[#allocation2] sm:$0xff]  ;;  %v515_v10 = vld [vmem:[#allocation2 + $0x8] sm:$0xff] }
 0x115   : > { %790 = sbr.rel (%p896_p1) target bundleno = 296 (0x128), region = 105 }
 0x116   : > { %v936_v11 = vpop.f32.mrf.mxu0  ;;  %v943_v12 = vpop.f32.mrf.mxu1 }
 0x117   : > { %509 = vst [vmem:[#allocation3 + $0x8] sm:$0xff] %v943_v12 }
 0x118   : > { %v414_v13 = vpop.f32.mrf.mxu0  ;;  %v499_v14 = vpop.f32.mrf.mxu1 }
 0x119   : > { %508 = vst [vmem:[#allocation3] sm:$0xff] %v499_v14 }
 0x11a   : > { %v1333_v17 = vmov 0.0   ;;  %v1337_v18 = vmov 0.0  }
 0x11b LB: >> { %s524_s17 = scalar_lea.vmem [#allocation3], %s1343_s29  ;;  %s519_s29 = sadd.s32 1, %s1343_s29   ;;  %s1343_s29 = sphi %s1341_s29, %s519_s29   ;;  %v1339_v18 = vphi %v1337_v18, %v1338_v18   ;;  %v1335_v17 = vphi %v1333_v17, %v1334_v17  }
 0x11c   : >> { %p518_p7 = scmp.ge.s32.totalorder %s519_s29, %s1552_s20 }
 0x120   : >> { %v885_v19 = vld [vmem:[%s524_s17] ss:$0 sm:$0xff] }
 0x121   : >> { %v530_v20 = vadd.f32 %v885_v19, %v414_v13  ;;  %v531_v21 = vadd.f32 %v936_v11, %v885_v19 }
 0x123   : >> { %v886_v22 = vclamps-f32 %v530_v20, 1.0  ;;  %v887_v23 = vclamps-f32 %v531_v21, 1.0  ;;  %521 = sbr.rel (!%p518_p7) target bundleno = 283 (0x11b), region = 111 }
 0x125   : >> { %v536_v24 = vadd.f32 %v1339_v18, %v886_v22   ;;  %v537_v25 = vadd.f32 %v1335_v17, %v887_v23  }
 0x127   : >> { %v1334_v17 = vmov %v537_v25   ;;  %v1338_v18 = vmov %v536_v24   ;;  %v1346_v15 = vmov (%p518_p7), %v537_v25   ;;  %v1350_v16 = vmov (%p518_p7), %v536_v24  }
 0x128 PF: > { %v538_v26 = vadd.f32 %v1351_v16, %v514_v9  ;;  %v539_v27 = vadd.f32 %v1347_v15, %v515_v10  ;;  %p888_p8 = scmp.ne.s32.totalorder %s1315_s24, 2  ;;  %v1351_v16 = vphi %v1349_v16, %v1350_v16   ;;  %v1347_v15 = vphi %v1345_v15, %v1346_v15  }
 0x12a   : > { %540 = vst [vmem:[#allocation2] sm:$0xff] %v538_v26  ;;  %541 = vst [vmem:[#allocation2 + $0x8] sm:$0xff] %v539_v27  ;;  %545 = sbr.rel (%p888_p8) target bundleno = 534 (0x216), region = 71 }
 0x12f   : > { %v565_v28 = vld [vmem:[%s1676_s4 + $0x78] sm:$0xff]  ;;  %v564_v29 = vld [vmem:[%s1676_s4 + $0x70] sm:$0xff]  ;;  %948 = vmatprep.mubr.msk.f32.mxu0 %vm341_vm0, %v1541_v5  ;;  %v563_v30 = vld [vmem:[%s1676_s4 + $0x68] sm:$0xff] }
 0x130   : > { %951 = vmatprep.subr.mxu1 %v565_v28  ;;  %v562_v31 = vld [vmem:[%s1676_s4 + $0x60] sm:$0xff]  ;;  %v567_v32 = vld [vmem:[#allocation9 + $0x8] sm:$0xff]  ;;  %v561_v34 = vld [vmem:[%s1676_s4 + $0x58] sm:$0xff] }
 0x131   : > { %952 = vmatpush3.msra.mxu1 %v565_v28  ;;  %944 = vmatprep.subr.mxu0 %v567_v32  ;;  %v566_v33 = vld [vmem:[#allocation9] sm:$0xff]  ;;  %v560_v37 = vld [vmem:[%s1676_s4 + $0x50] sm:$0xff]  ;;  %v559_v38 = vld [vmem:[%s1676_s4 + $0x48] sm:$0xff] }
 0x132   : > { %953 = vmatprep.subr.mxu1 %v564_v29  ;;  %945 = vmatpush3.msra.mxu0 %v567_v32  ;;  %v546_v35 = vld [vmem:[#allocation2] sm:$0xff]  ;;  %v557_v40 = vld [vmem:[%s1676_s4 + $0x38] sm:$0xff]  ;;  %v556_v41 = vld [vmem:[%s1676_s4 + $0x30] sm:$0xff] }
 0x133   : > { %954 = vmatpush3.msra.mxu1 %v564_v29  ;;  %946 = vmatprep.subr.mxu0 %v566_v33  ;;  %v548_v36 = vmul.f32 0.025, %v546_v35  ;;  %v558_v39 = vld [vmem:[%s1676_s4 + $0x40] sm:$0xff]  ;;  %v555_v42 = vld [vmem:[%s1676_s4 + $0x28] sm:$0xff]  ;;  %v553_v44 = vld [vmem:[%s1676_s4 + $0x18] sm:$0xff] }
 0x134   : > { %955 = vmatprep.subr.mxu1 %v563_v30  ;;  %947 = vmatpush3.msra.mxu0 %v566_v33  ;;  %v554_v43 = vld [vmem:[%s1676_s4 + $0x20] sm:$0xff]  ;;  %v552_v45 = vld [vmem:[%s1676_s4 + $0x10] sm:$0xff]  ;;  %v551_v46 = vld [vmem:[%s1676_s4 + $0x8] sm:$0xff] }
 0x135   : > { %956 = vmatpush3.msra.mxu1 %v563_v30  ;;  %949 = vmatmul.mubr.msk.f32.vlgmr.msra.gmra.mxu0 %vm341_vm0, %v1543_v7  ;;  %v547_v47 = vld [vmem:[#allocation2 + $0x8] sm:$0xff]  ;;  %v550_v48 = vld [vmem:[%s1676_s4] sm:$0xff] }
 0x136   : > { %957 = vmatprep.subr.mxu1 %v562_v31  ;;  %983 = vmatprep.mubr.f32.mxu1 %v548_v36  ;;  %v549_v49 = vmul.f32 0.025, %v547_v47 }
 0x137   : > { %958 = vmatpush3.msra.mxu1 %v562_v31 }
 0x138   : > { %959 = vmatprep.subr.mxu1 %v561_v34 }
 0x139   : > { %960 = vmatpush3.msra.mxu1 %v561_v34 }
 0x13a   : > { %961 = vmatprep.subr.mxu1 %v560_v37 }
 0x13b   : > { %962 = vmatpush3.msra.mxu1 %v560_v37 }
 0x13c   : > { %963 = vmatprep.subr.mxu1 %v559_v38 }
 0x13d   : > { %964 = vmatpush3.msra.mxu1 %v559_v38 }
 0x13e   : > { %965 = vmatprep.subr.mxu1 %v558_v39 }
 0x13f   : > { %966 = vmatpush3.msra.mxu1 %v558_v39 }
 0x140   : > { %967 = vmatprep.subr.mxu1 %v557_v40 }
 0x141   : > { %968 = vmatpush3.msra.mxu1 %v557_v40 }
 0x142   : > { %969 = vmatprep.subr.mxu1 %v556_v41 }
 0x143   : > { %970 = vmatpush3.msra.mxu1 %v556_v41 }
 0x144   : > { %971 = vmatprep.subr.mxu1 %v555_v42 }
 0x145   : > { %972 = vmatpush3.msra.mxu1 %v555_v42 }
 0x146   : > { %973 = vmatprep.subr.mxu1 %v554_v43 }
 0x147   : > { %974 = vmatpush3.msra.mxu1 %v554_v43 }
 0x148   : > { %975 = vmatprep.subr.mxu1 %v553_v44 }
 0x149   : > { %976 = vmatpush3.msra.mxu1 %v553_v44 }
 0x14a   : > { %977 = vmatprep.subr.mxu1 %v552_v45 }
 0x14b   : > { %978 = vmatpush3.msra.mxu1 %v552_v45 }
 0x14c   : > { %979 = vmatprep.subr.mxu1 %v551_v46 }
 0x14d   : > { %980 = vmatpush3.msra.mxu1 %v551_v46 }
 0x14e   : > { %981 = vmatprep.subr.mxu1 %v550_v48 }
 0x14f   : > { %982 = vmatpush3.msra.mxu1 %v550_v48 }
 0x150   : > { %984 = vmatmul.mubr.f32.vlgmr.msra.gmra.mxu1 %v549_v49 }
 0x1f5   : > { %v950_v50 = vpop.f32.mrf.mxu0 }
 0x1f7   : > { %v634_v53 = vpop.f32.mrf.mxu0 }
 0x210   : > { %v985_v51 = vpop.f32.mrf.mxu1 }
 0x211   : > { %v715_v52 = vadd.f32 %v985_v51, %v950_v50 }
 0x212   : > { %v709_v54 = vpop.f32.mrf.mxu1 }
 0x213   : > { %719 = vst [vmem:[%s1538_s13 + $0x8] sm:$0xff] %v715_v52  ;;  %v710_v55 = vadd.f32 %v709_v54, %v634_v53 }
 0x215   : > { %718 = vst [vmem:[%s1538_s13] sm:$0xff] %v710_v55 }
 0x216 PF: > { %s899_s12 = sshll.u32 %s1319_s25, 8  ;;  %s734_s19 = sshll.u32 %s1538_s13, 4  ;;  %s1617_s19 = int_to_ptr.vmem [resolvable:$true] %s734_s19 }
 0x217   : > { %s1614_s17 = scalar_lea.hbm %s1678_s6, %s899_s12  ;;  %s1621_s18 = scalar_lea.sflag [#allocation6], %s315_s7 }
 0x218   : > { %s1211_s14 = scalar_lea.vmem %s1617_s19, 256  ;;  %s1359_s25 = smov [#allocation10]  }
 0x219   : > { %p1212_p11 = scmp.ne.s32.totalorder %s1617_s19, %s1211_s14  ;;  %s1215_s8 = sshll.u32 %s1359_s25, 4  ;;  %s1216_s8 = int_to_ptr.vmem [resolvable:$false] %s1215_s8 }
 0x21a   : > { %s1217_s30 = scalar_lea.vmem %s1216_s8, 512  ;;  %p1218_p5 = scmp.lt.s32.totalorder %s1617_s19, %s1216_s8 }
 0x21b   : > { %p1213_p12 = pnand %p1212_p11, %p1447_p3  ;;  %p1219_p4 = scmp.lt.s32.totalorder %s1217_s30, %s1211_s14 }
 0x21d   : > { %p1214_p2 = pneg %p1213_p12  ;;  %p1220_p6 = por %p1219_p4, %p1218_p5 }
 0x21f   : > { %p1221_p9 = pnand %p1220_p6, %p1214_p2 }
 0x221   : > { %1224 = shalt.err (!%p1221_p9)
}
 0x222   : > { %s1225_s7 = scalar_lea.hbm %s1614_s17, 256  ;;  %s1229_s24 = scalar_lea.hbm %s1678_s6, 768 }
 0x223   : > { %p1226_p10 = scmp.ne.s32.totalorder %s1614_s17, %s1225_s7  ;;  %p1230_p1 = scmp.lt.s32.totalorder %s1614_s17, %s1678_s6 }
 0x224   : > { %p1231_p7 = scmp.lt.s32.totalorder %s1229_s24, %s1225_s7 }
 0x225   : > { %p1227_p13 = pnand %p1226_p10, %p1447_p3 }
 0x226   : > { %p1232_p8 = por %p1231_p7, %p1230_p1 }
 0x227   : > { %p1228_p0 = pneg %p1227_p13 }
 0x229   : > { %p1233_p11 = pnand %p1232_p8, %p1228_p0 }
 0x22b   : > { %1236 = shalt.err (!%p1233_p11)
}
 0x22c   : > { %s1360_s20 = smov 128   ;;  %s1361_s29 = smov 8  }
 0x22d   : > { %998 = dma.vmem_to_hbm [thread:$0]  (%p1447_p3), %s1617_s19, 256, %s1614_s17, %s1621_s18, %s1360_s20, %s1360_s20, %s1361_s29  }
 0x22e PF: > { %p1020_p12 = scmp.ge.s32.totalorder %s1331_s28, 2  ;;  %s749_s14 = sand.u32 1, %s1303_s21  }
 0x22f   : > { %p1687_p2 = scmp.ne.s32.totalorder %s1683_s11, 0  ;;  %s750_s25 = scalar_lea.sflag [#allocation6], %s749_s14 }
 0x231   : > { %p1011_p5 = pnand %p1020_p12, %p1687_p2 }
 0x233   : > { %p1012_p4 = pneg %p1011_p5 }
 0x235   : > { %1298 = dma.done.wait (%p1012_p4), %s750_s25, 256  }
 0x236   : > { %1300 = vsyncadd (%p1012_p4), %s750_s25, 4294967040  ;;  %s21_s28 = sadd.s32 1, %s1331_s28   ;;  %s1688_s10 = sld [smem:[#allocation14_spill]] }
 0x237   : > { %p18_p6 = scmp.ge.s32.totalorder %s21_s28, 11   ;;  %s1689_s17 = sld [smem:[#allocation15_spill]] }
 0x238   : > { %s1690_s21 = smov %s1307_s22  ;;  %s1691_s22 = smov %s1311_s23 }
 0x239   : > { %s1692_s23 = smov %s1474_s15  ;;  %s1693_s24 = smov %s1323_s26 }
 0x23a   : > { %s1694_s25 = smov %s1327_s27  ;;  %20 = sbr.rel (!%p18_p6) target bundleno = 7 (0x7), region = 122 }
 0x23c   : > { %s1695_s26 = smov %s1688_s10 }
 0x23d   : > { %s1696_s27 = smov %s1689_s17 }
 0x23f   :  { %755 = vsyncpa [#allocation5], 1 }
 0x240   :  { %757 = vsyncpa [#allocation5 + $0x1], 1 }
 0x241   :  { %758 = vsyncpa [#allocation8], 1 }
 0x242   :  { %759 = vsyncpa [#allocation6], 1 }
 0x243   :  { %761 = vsyncpa [#allocation6 + $0x1], 1 }

</bundles_post_ra>
